<compile_context>
chip_gen: v5e
topology: v5e:2x2
jax: 0.10.0
libtpu: 0.0.40
codegen_flags: <defaults>
</compile_context>

<pallas_src>
import jax
import jax.numpy as jnp
from jax import lax
from jax.experimental import pallas as pl
from jax.experimental.pallas import tpu as pltpu


def _linear_kernel(x_ref, w_ref, o_ref):
    # F.linear: out = x @ W^T. Contract the last dim of both operands so Mosaic
    # feeds the MXU without an explicit transpose of the weight tile.
    o_ref[...] = lax.dot_general(
        x_ref[...],
        w_ref[...],
        dimension_numbers=(((1,), (1,)), ((), ())),
        preferred_element_type=jnp.float32,
    ).astype(o_ref.dtype)


def _choose_tile_n(n_pad128, k, b, itemsize, budget_bytes=24 << 20):
    """Largest out-feature tile fitting a double-buffered VMEM budget,
    preferring >= 2 grid steps (v7x megacore sharding) when N allows it."""
    for tn in (1024, 512, 256, 128):
        if tn > n_pad128:
            continue
        need = itemsize * (2 * tn * k + 2 * b * k + 2 * b * tn)
        if need > budget_bytes:
            continue
        if n_pad128 >= 2 * tn or tn == 128:
            return tn
    return 128


def linear_meta(net_in, net_params, *, tn=None):
    """out = net_in @ net_params.T  (F.linear, no bias)."""
    *lead, K = net_in.shape
    N, K2 = net_params.shape
    assert K == K2, f"in_features mismatch: {K} vs {K2}"

    x = net_in.reshape(-1, K)
    B = x.shape[0]
    # TODO(synk): for very large flattened batches, add a batch grid axis
    # (block (tb, K) / (tb, tn)) instead of keeping the full activation block
    # VMEM-resident.

    itemsize = jnp.dtype(x.dtype).itemsize
    n_pad128 = pl.cdiv(N, 128) * 128
    if tn is None:
        tn = _choose_tile_n(n_pad128, K, B, itemsize)

    # Pad out_features so the grid tiles evenly; extra columns are sliced off.
    N_pad = pl.cdiv(N, tn) * tn
    w = net_params
    if N_pad != N:
        w = jnp.pad(w, ((0, N_pad - N), (0, 0)))

    grid = (N_pad // tn,)

    # Double-buffered weight tile + resident activations + double-buffered
    # output tile, plus headroom. Clamped to stay under v7x's 64 MiB physical.
    vmem_need = itemsize * (2 * tn * K + 2 * B * K + 2 * B * tn) + (1 << 20)
    vmem_limit = int(min(max(vmem_need, 32 << 20), 60 << 20))

    out = pl.pallas_call(
        _linear_kernel,
        out_shape=jax.ShapeDtypeStruct((B, N_pad), x.dtype),
        grid_spec=pltpu.PrefetchScalarGridSpec(
            num_scalar_prefetch=0,
            grid=grid,
            in_specs=[
                pl.BlockSpec((B, K), lambda i: (0, 0)),   # activations: resident
                pl.BlockSpec((tn, K), lambda i: (i, 0)),  # weight tile: streamed
            ],
            out_specs=pl.BlockSpec((B, tn), lambda i: (0, i)),
        ),
        compiler_params=pltpu.CompilerParams(
            dimension_semantics=("parallel",),
            vmem_limit_bytes=vmem_limit,
        ),
    )(x, w)

    if N_pad != N:
        out = out[:, :N]
    return out.reshape(*lead, N)


if __name__ == "__main__":
    key = jax.random.PRNGKey(0)
    k_x, k_w = jax.random.split(key, 2)

    batch = 8
    in_features = 256
    out_features = 512

    net_in = jax.random.normal(k_x, (batch, in_features), dtype=jnp.float32)
    net_params = (
        jax.random.normal(k_w, (out_features, in_features), dtype=jnp.float32) * 0.05
    )

    out = linear_meta(net_in, net_params)
    out = jax.block_until_ready(out)

    # Pure-JAX reference check (F.linear with no bias).
    ref = net_in @ net_params.T
    assert out.shape == (batch, out_features), out.shape
    assert jnp.allclose(out, ref, atol=1e-4, rtol=1e-4), "mismatch vs reference"

    print("KERNEL_OK")
</pallas_src>

<mosaic_0001>
module attributes {stable_mosaic.version = 11 : i64} {
  func.func @_linear_kernel(%arg0: i32, %arg1: memref<8x256xf32, #tpu.memory_space<vmem>>, %arg2: memref<256x256xf32, #tpu.memory_space<vmem>>, %arg3: memref<8x256xf32, #tpu.memory_space<vmem>>) attributes {dimension_semantics = [#tpu.dimension_semantics<parallel>], iteration_bounds = array<i64: 2>, scalar_prefetch = 0 : i64, scratch_operands = 0 : i64, tpu.core_type = #tpu.core_type<tc>, window_params = [{pipeline_mode = #tpu.pipeline_mode<synchronous>, transform_indices = @transform_0, window_bounds = array<i64: 8, 256>}, {transform_indices = @transform_1, window_bounds = array<i64: 256, 256>}, {transform_indices = @transform_2, window_bounds = array<i64: 8, 256>}]} {
    %c0 = arith.constant 0 : index
    %c0_0 = arith.constant 0 : index
    %0 = vector.load %arg1[%c0, %c0_0] : memref<8x256xf32, #tpu.memory_space<vmem>>, vector<8x256xf32>
    %c0_1 = arith.constant 0 : index
    %c0_2 = arith.constant 0 : index
    %1 = vector.load %arg2[%c0_1, %c0_2] : memref<256x256xf32, #tpu.memory_space<vmem>>, vector<256x256xf32>
    %cst = arith.constant dense<0.000000e+00> : vector<8x256xf32>
    %2 = tpu.matmul %0, %1, %cst {dimension_numbers = #tpu.dot_dimension_numbers<[1], [1], [0], [0], [0, 0, 1, 0], [], []>} : vector<8x256xf32>, vector<256x256xf32>, vector<8x256xf32> -> vector<8x256xf32>
    %c0_3 = arith.constant 0 : index
    %c0_4 = arith.constant 0 : index
    %3 = vector.load %arg3[%c0_3, %c0_4] : memref<8x256xf32, #tpu.memory_space<vmem>>, vector<8x256xf32>
    tpu.vector_store %arg3[%c0_3, %c0_4], %2 {strides = array<i32>} : memref<8x256xf32, #tpu.memory_space<vmem>>, vector<8x256xf32>,
    return
  }
  func.func @transform_0(%arg0: i32) -> (i32, i32) {
    %c0_i32 = arith.constant 0 : i32
    %c0_i32_0 = arith.constant 0 : i32
    %c0_i32_1 = arith.constant 0 : i32
    return %c0_i32, %c0_i32_0 : i32, i32
  }
  func.func @transform_1(%arg0: i32) -> (i32, i32) {
    %c0_i32 = arith.constant 0 : i32
    %c0_i32_0 = arith.constant 0 : i32
    return %arg0, %c0_i32 : i32, i32
  }
  func.func @transform_2(%arg0: i32) -> (i32, i32) {
    %c0_i32 = arith.constant 0 : i32
    %c0_i32_0 = arith.constant 0 : i32
    return %c0_i32, %arg0 : i32, i32
  }
}

</mosaic_0001>

<bundles_post_ra>
// kernel: tpu_custom_call.1
= control target key start
LH: loop header
LB: loop body
LE: loop exit
PB: predicated region body
PF: predicated region fallthrough
CT: control target
= control target key end

     0   :  { %7 = vsyncpa [#allocation3], 0  ;;  %s867_s0 = inlined_call_operand.hbm [shape: f32[8,256], index: 0, kind: input, shape index: {}]   ;;  %s868_s1 = inlined_call_operand.hbm [shape: f32[512,256], index: 1, kind: input, shape index: {}]   ;;  %s869_s2 = inlined_call_operand.hbm [shape: f32[8,512], index: 2, kind: output, shape index: {}]  }
   0x1   :  { %8 = vsyncpa [#allocation6], 0 }
   0x2   :  { %10 = vsyncpa [#allocation6 + $0x1], 0 }
   0x3   :  { %11 = vsyncpa [#allocation4], 0 }
   0x4   :  { %13 = vsyncpa [#allocation4 + $0x1], 0  ;;  %s658_s9 = smov 0   ;;  %s660_s10 = smov 0  }
   0x5   :  { %s662_s11 = smov 0   ;;  %s664_s12 = smov 0  }
   0x6 LB: > { %s679_s13 = sadd.s32 4294967295, %s638_s12   ;;  %s429_s14 = sadd.s32 4294967294, %s638_s12   ;;  %s638_s12 = sphi %s664_s12, %s880_s12   ;;  %s634_s11 = sphi %s662_s11, %s879_s11   ;;  %s630_s10 = sphi %s660_s10, %s878_s10   ;;  %s626_s9 = sphi %s658_s9, %s877_s9  }
   0x7   : > { %s683_s15 = sadd.s32 1, %s638_s12   ;;  %s47_s16 = sadd.s32 1, %s634_s11 }
   0x8   : > { %s44_s17 = ssub.s32 %s638_s12, %s683_s15  ;;  %p54_p0 = scmp.ne.s32.totalorder %s634_s11, %s630_s10 }
   0x9   : > { %p45_p1 = scmp.eq.s32.totalorder %s44_s17, 0  ;;  %p55_p2 = scmp.eq.s32.totalorder %s638_s12, 0 }
   0xa   : > { %p60_p3 = scmp.ne.s32.totalorder %s630_s10, %s626_s9  ;;  %p61_p4 = scmp.eq.s32.totalorder %s679_s13, 0 }
   0xb   : > { %s695_s18 = scalar_select %p45_p1, %s634_s11, %s47_s16  }
   0xc   : > { %p697_p5 = por %p55_p2, %p54_p0  ;;  %p703_p6 = por %p61_p4, %p60_p3 }
   0xd   : > { %p84_p7 = scmp.eq.s32.totalorder %s679_s13, 1  ;;  %p90_p8 = scmp.eq.s32.totalorder %s429_s14, 1 }
   0xe   : > { %p430_p9 = scmp.ge.s32.totalorder %s638_s12, 1  ;;  %p97_p10 = scmp.lt.s32.totalorder %s638_s12, 3 }
   0xf   : > { %p710_p11 = por %p84_p7, %p54_p0  ;;  %p714_p12 = por %p90_p8, %p60_p3 }
  0x10   : > { %p718_p13 = pnand %p430_p9, %p97_p10  ;;  %s109_s26 = sshll.u32 %s867_s0, 4  ;;  %s110_s26 = int_to_ptr.hbm [resolvable:$true] %s109_s26 }
  0x11   : > { %s640_s27 = smov [#allocation2]   ;;  %p470_p3 = scmp.lt.s32.totalorder %s638_s12, 2 }
  0x12   : > { %p457_p1 = pneg %p718_p13  ;;  %s111_s28 = sshll.u32 %s640_s27, 4  ;;  %s112_s28 = int_to_ptr.vmem [resolvable:$true] %s111_s28 }
  0x13   : > { %s122_s29 = sand.u32 1, %s634_s11   ;;  %p734_p7 = pnand %p470_p3, %p697_p5 }
  0x14   : > { %p458_p2 = pnand %p457_p1, %p61_p4  ;;  %s433_s3 = sshll.u32 %s122_s29, 9 }
  0x15   : > { %s447_s4 = sshll.u32 %s638_s12, 9  ;;  %s126_s14 = scalar_lea.vmem [#allocation5], %s433_s3 }
  0x16   : > { %460 = dma.hbm_to_vmem [thread:$0]  (!%p458_p2), %s110_s26, 256, %s112_s28, [#allocation3]  }
  0x17   : > { %s132_s7 = scalar_lea.hbm %s868_s1, %s447_s4  ;;  %s135_s16 = sshll.u32 %s126_s14, 4  ;;  %s136_s16 = int_to_ptr.vmem [resolvable:$true] %s135_s16 }
  0x18   : > { %s133_s8 = sshll.u32 %s132_s7, 4  ;;  %s123_s17 = scalar_lea.sflag [#allocation6], %s122_s29  ;;  %s134_s8 = int_to_ptr.hbm [resolvable:$true] %s133_s8 }
  0x19   : > { %s538_s24 = sshra.s32 %s134_s8, 4  ;;  %p542_p8 = pneg %p734_p7  ;;  %s539_s24 = int_to_ptr.hbm [resolvable:$true] %s538_s24 }
  0x1a   : > { %s540_s19 = scalar_lea.hbm %s539_s24, 512  ;;  %s545_s27 = scalar_lea.hbm %s868_s1, 1024 }
  0x1b   : > { %p541_p5 = scmp.ne.s32.totalorder %s539_s24, %s540_s19  ;;  %p546_p1 = scmp.lt.s32.totalorder %s539_s24, %s868_s1 }
  0x1c   : > { %p547_p2 = scmp.lt.s32.totalorder %s545_s27, %s540_s19 }
  0x1d   : > { %p543_p9 = pnand %p542_p8, %p541_p5 }
  0x1e   : > { %p548_p3 = por %p547_p2, %p546_p1 }
  0x1f   : > { %p544_p10 = pneg %p543_p9 }
  0x21   : > { %p549_p0 = pnand %p548_p3, %p544_p10 }
  0x23   : > { %552 = shalt.err (!%p549_p0)
}
  0x24   : > { %s641_s29 = smov 256   ;;  %s642_s3 = smov 16  }
  0x25   : > { %464 = dma.hbm_to_vmem [thread:$0]  (!%p734_p7), %s134_s8, 8192, %s136_s16, %s123_s17, %s641_s29, %s641_s29, %s642_s3  }
  0x26   : > { %147 = sbr.rel (%p718_p13) target bundleno = 249 (0xf9), region = 28 }
  0x2b   : > { %613 = dma.done.wait (%p61_p4), [#allocation3], 256  }
  0x2c   : > { %615 = vsyncadd (%p61_p4), [#allocation3], 4294967040  ;;  %s759_s5 = sand.u32 1, %s630_s10  }
  0x2d   : > { %s439_s6 = sshll.u32 %s759_s5, 9  ;;  %s155_s7 = scalar_lea.sflag [#allocation6], %s759_s5 }
  0x2e   : > { %s763_s14 = scalar_lea.vmem [#allocation5], %s439_s6 }
  0x2f   : > { %617 = dma.done.wait (%p703_p6), %s155_s7, 8192  }
  0x30   : > { %619 = vsyncadd (%p703_p6), %s155_s7, 4294959104  ;;  %v246_v0 = vld [vmem:[%s763_s14 + $0x1f0] sm:$0xff]  ;;  %v247_v1 = vld [vmem:[%s763_s14 + $0x1f8] sm:$0xff]  ;;  %s440_s20 = sshll.u32 %s759_s5, 4  ;;  %s448_s23 = sshll.u32 %s679_s13, 4 }
  0x31   : > { %288 = vmatpush.xpose.msra.mxu2 %v246_v0  ;;  %308 = vmatpush.xpose.msra.mxu3 %v247_v1  ;;  %v214_v2 = vld [vmem:[%s763_s14 + $0xf0] sm:$0xff]  ;;  %v215_v3 = vld [vmem:[%s763_s14 + $0xf8] sm:$0xff]  ;;  %v244_v4 = vld [vmem:[%s763_s14 + $0x1e0] sm:$0xff]  ;;  %s342_s16 = scalar_lea.hbm %s869_s2, %s448_s23  ;;  %s179_s17 = scalar_lea.vmem [#allocation7], %s440_s20 }
  0x32   : > { %v245_v5 = vld [vmem:[%s763_s14 + $0x1e8] sm:$0xff]  ;;  %248 = vmatpush.xpose.msra.mxu0 %v214_v2  ;;  %268 = vmatpush.xpose.msra.mxu1 %v215_v3  ;;  %v212_v6 = vld [vmem:[%s763_s14 + $0xe0] sm:$0xff]  ;;  %v242_v8 = vld [vmem:[%s763_s14 + $0x1d0] sm:$0xff]  ;;  %s344_s24 = sshll.u32 %s179_s17, 4  ;;  %s346_s19 = sshll.u32 %s342_s16, 4  ;;  %s345_s24 = int_to_ptr.vmem [resolvable:$true] %s344_s24  ;;  %s347_s19 = int_to_ptr.hbm [resolvable:$true] %s346_s19 }
  0x33   : > { %v213_v7 = vld [vmem:[%s763_s14 + $0xe8] sm:$0xff]  ;;  %v243_v9 = vld [vmem:[%s763_s14 + $0x1d8] sm:$0xff]  ;;  %v210_v10 = vld [vmem:[%s763_s14 + $0xd0] sm:$0xff]  ;;  %s331_s25 = scalar_lea.sflag [#allocation4], %s759_s5  ;;  %s582_s13 = sshra.s32 %s347_s19, 4  ;;  %s583_s13 = int_to_ptr.hbm [resolvable:$true] %s582_s13 }
  0x34   : > { %v211_v11 = vld [vmem:[%s763_s14 + $0xd8] sm:$0xff]  ;;  %v240_v12 = vld [vmem:[%s763_s14 + $0x1c0] sm:$0xff]  ;;  %v241_v13 = vld [vmem:[%s763_s14 + $0x1c8] sm:$0xff]  ;;  %s584_s26 = scalar_lea.hbm %s583_s13, 16  ;;  %s588_s4 = scalar_lea.hbm %s869_s2, 32 }
  0x35   : > { %289 = vmatpush.xpose.msra.mxu2 %v244_v4  ;;  %309 = vmatpush.xpose.msra.mxu3 %v245_v5  ;;  %v208_v14 = vld [vmem:[%s763_s14 + $0xc0] sm:$0xff]  ;;  %v209_v15 = vld [vmem:[%s763_s14 + $0xc8] sm:$0xff]  ;;  %v238_v16 = vld [vmem:[%s763_s14 + $0x1b0] sm:$0xff]  ;;  %p585_p4 = scmp.ne.s32.totalorder %s583_s13, %s584_s26  ;;  %p589_p0 = scmp.lt.s32.totalorder %s583_s13, %s869_s2 }
  0x36   : > { %249 = vmatpush.xpose.msra.mxu0 %v212_v6  ;;  %269 = vmatpush.xpose.msra.mxu1 %v213_v7  ;;  %v239_v17 = vld [vmem:[%s763_s14 + $0x1b8] sm:$0xff]  ;;  %v206_v18 = vld [vmem:[%s763_s14 + $0xb0] sm:$0xff]  ;;  %v236_v20 = vld [vmem:[%s763_s14 + $0x1a0] sm:$0xff]  ;;  %p590_p7 = scmp.lt.s32.totalorder %s588_s4, %s584_s26 }
  0x37   : > { %v207_v19 = vld [vmem:[%s763_s14 + $0xb8] sm:$0xff]  ;;  %v237_v21 = vld [vmem:[%s763_s14 + $0x1a8] sm:$0xff]  ;;  %v204_v22 = vld [vmem:[%s763_s14 + $0xa0] sm:$0xff]  ;;  %p586_p6 = pnand %p585_p4, %p710_p11 }
  0x38   : > { %v205_v23 = vld [vmem:[%s763_s14 + $0xa8] sm:$0xff]  ;;  %v234_v24 = vld [vmem:[%s763_s14 + $0x190] sm:$0xff]  ;;  %v235_v25 = vld [vmem:[%s763_s14 + $0x198] sm:$0xff]  ;;  %p591_p5 = por %p590_p7, %p589_p0 }
  0x39   : > { %290 = vmatpush.xpose.msra.mxu2 %v242_v8  ;;  %310 = vmatpush.xpose.msra.mxu3 %v243_v9  ;;  %v202_v26 = vld [vmem:[%s763_s14 + $0x90] sm:$0xff]  ;;  %v203_v27 = vld [vmem:[%s763_s14 + $0x98] sm:$0xff]  ;;  %v232_v28 = vld [vmem:[%s763_s14 + $0x180] sm:$0xff]  ;;  %p587_p13 = pneg %p586_p6 }
  0x3a   : > { %250 = vmatpush.xpose.msra.mxu0 %v210_v10  ;;  %270 = vmatpush.xpose.msra.mxu1 %v211_v11  ;;  %v233_v29 = vld [vmem:[%s763_s14 + $0x188] sm:$0xff]  ;;  %v200_v30 = vld [vmem:[%s763_s14 + $0x80] sm:$0xff]  ;;  %v230_v32 = vld [vmem:[%s763_s14 + $0x170] sm:$0xff] }
  0x3b   : > { %v201_v31 = vld [vmem:[%s763_s14 + $0x88] sm:$0xff]  ;;  %v231_v33 = vld [vmem:[%s763_s14 + $0x178] sm:$0xff]  ;;  %v198_v34 = vld [vmem:[%s763_s14 + $0x70] sm:$0xff]  ;;  %p592_p8 = pnand %p591_p5, %p587_p13 }
  0x3c   : > { %v199_v35 = vld [vmem:[%s763_s14 + $0x78] sm:$0xff]  ;;  %v228_v36 = vld [vmem:[%s763_s14 + $0x160] sm:$0xff]  ;;  %v229_v37 = vld [vmem:[%s763_s14 + $0x168] sm:$0xff] }
  0x3d   : > { %291 = vmatpush.xpose.msra.mxu2 %v240_v12  ;;  %311 = vmatpush.xpose.msra.mxu3 %v241_v13  ;;  %v196_v38 = vld [vmem:[%s763_s14 + $0x60] sm:$0xff]  ;;  %v197_v39 = vld [vmem:[%s763_s14 + $0x68] sm:$0xff]  ;;  %v226_v40 = vld [vmem:[%s763_s14 + $0x150] sm:$0xff] }
  0x3e   : > { %251 = vmatpush.xpose.msra.mxu0 %v208_v14  ;;  %271 = vmatpush.xpose.msra.mxu1 %v209_v15  ;;  %v227_v41 = vld [vmem:[%s763_s14 + $0x158] sm:$0xff]  ;;  %v194_v42 = vld [vmem:[%s763_s14 + $0x50] sm:$0xff]  ;;  %v224_v44 = vld [vmem:[%s763_s14 + $0x140] sm:$0xff] }
  0x3f   : > { %v195_v43 = vld [vmem:[%s763_s14 + $0x58] sm:$0xff]  ;;  %v225_v45 = vld [vmem:[%s763_s14 + $0x148] sm:$0xff]  ;;  %v192_v46 = vld [vmem:[%s763_s14 + $0x40] sm:$0xff] }
  0x40   : > { %v193_v47 = vld [vmem:[%s763_s14 + $0x48] sm:$0xff]  ;;  %v222_v48 = vld [vmem:[%s763_s14 + $0x130] sm:$0xff]  ;;  %v223_v49 = vld [vmem:[%s763_s14 + $0x138] sm:$0xff] }
  0x41   : > { %292 = vmatpush.xpose.msra.mxu2 %v238_v16  ;;  %312 = vmatpush.xpose.msra.mxu3 %v239_v17  ;;  %v190_v50 = vld [vmem:[%s763_s14 + $0x30] sm:$0xff]  ;;  %v191_v51 = vld [vmem:[%s763_s14 + $0x38] sm:$0xff]  ;;  %v220_v52 = vld [vmem:[%s763_s14 + $0x120] sm:$0xff] }
  0x42   : > { %252 = vmatpush.xpose.msra.mxu0 %v206_v18  ;;  %272 = vmatpush.xpose.msra.mxu1 %v207_v19  ;;  %v221_v53 = vld [vmem:[%s763_s14 + $0x128] sm:$0xff]  ;;  %v188_v54 = vld [vmem:[%s763_s14 + $0x20] sm:$0xff]  ;;  %v218_v56 = vld [vmem:[%s763_s14 + $0x110] sm:$0xff] }
  0x43   : > { %v189_v55 = vld [vmem:[%s763_s14 + $0x28] sm:$0xff]  ;;  %v219_v57 = vld [vmem:[%s763_s14 + $0x118] sm:$0xff]  ;;  %v186_v58 = vld [vmem:[%s763_s14 + $0x10] sm:$0xff] }
  0x44   : > { %v187_v59 = vld [vmem:[%s763_s14 + $0x18] sm:$0xff]  ;;  %v216_v60 = vld [vmem:[%s763_s14 + $0x100] sm:$0xff]  ;;  %v217_v61 = vld [vmem:[%s763_s14 + $0x108] sm:$0xff] }
  0x45   : > { %293 = vmatpush.xpose.msra.mxu2 %v236_v20  ;;  %313 = vmatpush.xpose.msra.mxu3 %v237_v21  ;;  %v184_v62 = vld [vmem:[%s763_s14] sm:$0xff]  ;;  %v185_v63 = vld [vmem:[%s763_s14 + $0x8] sm:$0xff]  ;;  %v182_v0 = vld [vmem:[#allocation2] sm:$0xff] }
  0x46   : > { %253 = vmatpush.xpose.msra.mxu0 %v204_v22  ;;  %273 = vmatpush.xpose.msra.mxu1 %v205_v23  ;;  %v183_v1 = vld [vmem:[#allocation2 + $0x8] sm:$0xff] }
  0x49   : > { %294 = vmatpush.xpose.msra.mxu2 %v234_v24  ;;  %314 = vmatpush.xpose.msra.mxu3 %v235_v25 }
  0x4a   : > { %254 = vmatpush.xpose.msra.mxu0 %v202_v26  ;;  %274 = vmatpush.xpose.msra.mxu1 %v203_v27 }
  0x4d   : > { %295 = vmatpush.xpose.msra.mxu2 %v232_v28  ;;  %315 = vmatpush.xpose.msra.mxu3 %v233_v29 }
  0x4e   : > { %255 = vmatpush.xpose.msra.mxu0 %v200_v30  ;;  %275 = vmatpush.xpose.msra.mxu1 %v201_v31 }
  0x51   : > { %296 = vmatpush.xpose.msra.mxu2 %v230_v32  ;;  %316 = vmatpush.xpose.msra.mxu3 %v231_v33 }
  0x52   : > { %256 = vmatpush.xpose.msra.mxu0 %v198_v34  ;;  %276 = vmatpush.xpose.msra.mxu1 %v199_v35 }
  0x55   : > { %297 = vmatpush.xpose.msra.mxu2 %v228_v36  ;;  %317 = vmatpush.xpose.msra.mxu3 %v229_v37 }
  0x56   : > { %257 = vmatpush.xpose.msra.mxu0 %v196_v38  ;;  %277 = vmatpush.xpose.msra.mxu1 %v197_v39 }
  0x59   : > { %298 = vmatpush.xpose.msra.mxu2 %v226_v40  ;;  %318 = vmatpush.xpose.msra.mxu3 %v227_v41 }
  0x5a   : > { %258 = vmatpush.xpose.msra.mxu0 %v194_v42  ;;  %278 = vmatpush.xpose.msra.mxu1 %v195_v43 }
  0x5d   : > { %299 = vmatpush.xpose.msra.mxu2 %v224_v44  ;;  %319 = vmatpush.xpose.msra.mxu3 %v225_v45 }
  0x5e   : > { %259 = vmatpush.xpose.msra.mxu0 %v192_v46  ;;  %279 = vmatpush.xpose.msra.mxu1 %v193_v47 }
  0x61   : > { %300 = vmatpush.xpose.msra.mxu2 %v222_v48  ;;  %320 = vmatpush.xpose.msra.mxu3 %v223_v49 }
  0x62   : > { %260 = vmatpush.xpose.msra.mxu0 %v190_v50  ;;  %280 = vmatpush.xpose.msra.mxu1 %v191_v51 }
  0x65   : > { %301 = vmatpush.xpose.msra.mxu2 %v220_v52  ;;  %321 = vmatpush.xpose.msra.mxu3 %v221_v53 }
  0x66   : > { %261 = vmatpush.xpose.msra.mxu0 %v188_v54  ;;  %281 = vmatpush.xpose.msra.mxu1 %v189_v55 }
  0x69   : > { %302 = vmatpush.xpose.msra.mxu2 %v218_v56  ;;  %322 = vmatpush.xpose.msra.mxu3 %v219_v57 }
  0x6a   : > { %262 = vmatpush.xpose.msra.mxu0 %v186_v58  ;;  %282 = vmatpush.xpose.msra.mxu1 %v187_v59 }
  0x6d   : > { %303 = vmatpush.xpose.msra.mxu2 %v216_v60  ;;  %323 = vmatpush.xpose.msra.mxu3 %v217_v61 }
  0x6e   : > { %263 = vmatpush.xpose.msra.mxu0 %v184_v62  ;;  %283 = vmatpush.xpose.msra.mxu1 %v185_v63 }
  0x70   : > { %304 = vmatmul.f32.vlgmr.msra.gmra.mxu2 %v182_v0  ;;  %324 = vmatmul.f32.vlgmr.msra.gmra.mxu3 %v183_v1 }
  0x71   : > { %264 = vmatmul.f32.vlgmr.msra.gmra.mxu0 %v182_v0  ;;  %284 = vmatmul.f32.vlgmr.msra.gmra.mxu1 %v183_v1 }
  0xee   : > { %v265_v2 = vpop.f32.mrf.mxu0  ;;  %v285_v3 = vpop.f32.mrf.mxu1 }
  0xef   : > { %v286_v4 = vadd.f32 %v285_v3, %v265_v2 }
  0xf1   : > { %328 = vst [vmem:[%s179_s17] sm:$0xff] %v286_v4 }
  0xf3   : > { %v305_v5 = vpop.f32.mrf.mxu2  ;;  %v325_v6 = vpop.f32.mrf.mxu3 }
  0xf4   : > { %v326_v7 = vadd.f32 %v325_v6, %v305_v5 }
  0xf6   : > { %329 = vst [vmem:[%s179_s17 + $0x8] sm:$0xff] %v326_v7 }
  0xf7   : > { %595 = shalt.err (!%p592_p8)
}
  0xf8   : > { %455 = dma.vmem_to_hbm [thread:$0]  (%p710_p11), %s345_s24, 256, %s347_s19, %s331_s25  }
  0xf9 PF: > { %s358_s5 = sand.u32 1, %s626_s9   ;;  %p876_p9 = scmp.ge.s32.totalorder %s638_s12, 2 }
  0xfa   : > { %s359_s6 = scalar_lea.sflag [#allocation4], %s358_s5 }
  0xfb   : > { %p466_p10 = pnand %p876_p9, %p714_p12 }
  0xfd   : > { %p467_p1 = pneg %p466_p10 }
  0xff   : > { %621 = dma.done.wait (%p467_p1), %s359_s6, 256  }
 0x100   : > { %623 = vsyncadd (%p467_p1), %s359_s6, 4294967040  ;;  %p16_p2 = scmp.ge.s32.totalorder %s683_s15, 4   ;;  %s877_s9 = smov %s630_s10 }
 0x101   : > { %s878_s10 = smov %s634_s11  ;;  %s879_s11 = smov %s695_s18 }
 0x102   : > { %s880_s12 = smov %s683_s15  ;;  %18 = sbr.rel (!%p16_p2) target bundleno = 6 (0x6), region = 78 }
 0x107   :  { %365 = vsyncpa [#allocation3], 1 }
 0x108   :  { %367 = vsyncpa [#allocation3 + $0x1], 1 }
 0x109   :  { %368 = vsyncpa [#allocation6], 1 }
 0x10a   :  { %370 = vsyncpa [#allocation6 + $0x1], 1 }
 0x10b   :  { %371 = vsyncpa [#allocation4], 1 }
 0x10c   :  { %373 = vsyncpa [#allocation4 + $0x1], 1 }

</bundles_post_ra>
